<compile_context>
chip_gen: v7x
topology: tpu7x:2x2x1
jax: 0.10.0
libtpu: 0.0.40
codegen_flags: <defaults>
</compile_context>

<pallas_src>
import functools

import jax
import jax.numpy as jnp
from jax import lax
from jax.experimental import pallas as pl
from jax.experimental.pallas import tpu as pltpu

EPS = 1e-8


def _round_up(a, b):
    return ((a + b - 1) // b) * b


def _vmem_limit_bytes():
    cap = 64 * 1024 * 1024            # conservative fallback (v7x physical VMEM)
    try:
        info = pltpu.get_tpu_info()
        cap = int(getattr(info, "vmem_capacity_bytes", cap) or cap)
    except Exception:
        pass
    # ~5/8 of physical: 40 MiB on v7x (64 MiB), 80 MiB on v5e/v6e (128 MiB).
    return min((cap * 5) // 8, 100 * 1024 * 1024)


def _pick_group(n):
    for g in (64, 32, 16, 8):
        if n % g == 0:
            return g
    return n


def _pick_lt(l_out, n, c_out, stride, h_blk, lead, x_bytes, mm_bytes, out_bytes,
             cap, budget):
    """Largest time tile (multiple of h_blk) whose pass-2 VMEM footprint fits."""
    lt = max(min(_round_up(l_out, h_blk), _round_up(cap, h_blk)), h_blk)

    def vmem_bytes(lt_):
        main_len = lt_ * stride
        chunk_len = lead + main_len + h_blk
        b = 2 * n * main_len * x_bytes            # main input, double buffered
        b += 4 * n * h_blk * x_bytes              # two halo views, double buffered
        b += n * chunk_len * x_bytes              # assembled chunk scratch
        b += n * lt_ * mm_bytes                   # y scratch (matmul operand)
        b += 2 * c_out * n * mm_bytes             # folded pointwise weights
        b += 2 * c_out * lt_ * out_bytes          # output tile, double buffered
        b += c_out * lt_ * 4                      # f32 matmul result
        return b

    while lt > h_blk and vmem_bytes(lt) > budget:
        lt -= h_blk
    return lt


def _x_specs(n, main_len, h_blk, k_len, num_t_s):
    """Three Blocked views of the *unpadded* x: left halo / main / right halo.

    Index maps are clamped so the DMA never starts out of bounds; boundary content
    is made correct by the in-kernel masks (which use logical column positions)."""
    rl = main_len // h_blk
    max_main = max((k_len - 1) // main_len, 0)
    max_halo = max((k_len - 1) // h_blk, 0)

    def _clamp(v, lo, hi):
        return jnp.maximum(jnp.minimum(v, hi), lo)

    def left_map(b, s, t):
        tt = s * num_t_s + t
        return (b, 0, _clamp(tt * rl - 1, 0, max_halo))

    def main_map(b, s, t):
        tt = s * num_t_s + t
        return (b, 0, _clamp(tt, 0, max_main))

    def right_map(b, s, t):
        tt = s * num_t_s + t
        return (b, 0, _clamp((tt + 1) * rl, 0, max_halo))

    return (pl.BlockSpec((1, n, h_blk), left_map),
            pl.BlockSpec((1, n, main_len), main_map),
            pl.BlockSpec((1, n, h_blk), right_map))


def _assemble_chunk(xl_ref, xm_ref, xr_ref, xc_ref, tt, *, k_len, padding, lead,
                    main_len, h_blk):
    """Build the contiguous, conv-padded, boundary-masked input chunk in VMEM.

    xc column q holds input column tt*main_len - lead + q; columns outside [0, K)
    (conv padding / array tail / DMA garbage) are zeroed, so the tap loop never
    needs per-tap masks or lane concatenates."""
    col0 = tt * main_len
    zero = jnp.zeros((), xc_ref.dtype)

    if padding > 0:
        lcol = (col0 - padding) + lax.broadcasted_iota(jnp.int32, (1, padding), 1)
        lvals = xl_ref[0, :, h_blk - padding:]
        xc_ref[:, lead - padding:lead] = jnp.where(
            (lcol >= 0) & (lcol < k_len), lvals, zero)

    main_ok = (col0 + main_len) <= k_len

    @pl.when(main_ok)
    def _():
        xc_ref[:, lead:lead + main_len] = xm_ref[0]

    @pl.when(jnp.logical_not(main_ok))
    def _():
        mcol = col0 + lax.broadcasted_iota(jnp.int32, (1, main_len), 1)
        xc_ref[:, lead:lead + main_len] = jnp.where(mcol < k_len, xm_ref[0], zero)

    rcol = (col0 + main_len) + lax.broadcasted_iota(jnp.int32, (1, h_blk), 1)
    xc_ref[:, lead + main_len:lead + main_len + h_blk] = jnp.where(
        rcol < k_len, xr_ref[0], zero)


def _dw_prelu_chunk(xc_ref, wdw, alpha, cg0, cg, j0, c, *, lead, padding, stride,
                    dilation, kernel_size):
    """Depthwise conv + PReLU for output columns [j0, j0+c), channels [cg0, cg0+cg).
    Tap-innermost functional accumulation keeps the (cg, c) accumulator in vregs."""
    acc = None
    for k in range(kernel_size):
        start = lead - padding + j0 * stride + k * dilation
        if stride == 1:
            sl = xc_ref[pl.ds(cg0, cg), pl.ds(start, c)]
        else:
            sl = xc_ref[pl.ds(cg0, cg), pl.ds(start, c, stride=stride)]
        term = sl.astype(jnp.float32) * wdw[cg0:cg0 + cg, k:k + 1]
        acc = term if acc is None else acc + term
    # nn.PReLU() default: a single shared slope.
    return jnp.where(acc > 0, acc, alpha * acc)


# ---------------------------- pass 1: global gLN stats ----------------------------
def _stats_kernel(xl_ref, xm_ref, xr_ref, wdw_ref, alpha_ref, stat_ref, xc_ref, *,
                  k_len, l_out, padding, lead, main_len, h_blk, stride, dilation,
                  kernel_size, lt, num_t_s, cg, c):
    s = pl.program_id(1)
    t = pl.program_id(2)
    tt = s * num_t_s + t

    @pl.when(t == 0)
    def _():
        stat_ref[...] = jnp.zeros_like(stat_ref)

    _assemble_chunk(xl_ref, xm_ref, xr_ref, xc_ref, tt, k_len=k_len,
                    padding=padding, lead=lead, main_len=main_len, h_blk=h_blk)

    wdw = wdw_ref[...].astype(jnp.float32)
    alpha = alpha_ref[0].astype(jnp.float32)
    n = wdw.shape[0]

    s1_parts, s2_parts = [], []
    for cg0 in range(0, n, cg):
        s1 = jnp.zeros((cg, 1), jnp.float32)
        s2 = jnp.zeros((cg, 1), jnp.float32)
        for j0 in range(0, lt, c):
            y = _dw_prelu_chunk(xc_ref, wdw, alpha, cg0, cg, j0, c, lead=lead,
                                padding=padding, stride=stride, dilation=dilation,
                                kernel_size=kernel_size)
            # Columns past L_out exist only due to x128 tile padding / the megacore
            # time split; they must not enter the gLN statistics.
            col = tt * lt + j0 + lax.broadcasted_iota(jnp.int32, (1, c), 1)
            y = jnp.where(col < l_out, y, 0.0)
            s1 = s1 + jnp.sum(y, axis=1, keepdims=True)
            s2 = s2 + jnp.sum(y * y, axis=1, keepdims=True)
        s1_parts.append(s1)
        s2_parts.append(s2)

    part = jnp.concatenate([jnp.concatenate(s1_parts, axis=0),
                            jnp.concatenate(s2_parts, axis=0)], axis=1)   # (n, 2)
    stat_ref[0, 0] += part


# ----------------- pass 2: depthwise+PReLU recompute + folded pointwise ------------
def _apply_kernel(xl_ref, xm_ref, xr_ref, wdw_ref, alpha_ref, weff_ref, beff_ref,
                  o_ref, xc_ref, y_ref, *, k_len, padding, lead, main_len, h_blk,
                  stride, dilation, kernel_size, lt, num_t_s, cg, c, precision):
    s = pl.program_id(1)
    t = pl.program_id(2)
    tt = s * num_t_s + t

    _assemble_chunk(xl_ref, xm_ref, xr_ref, xc_ref, tt, k_len=k_len,
                    padding=padding, lead=lead, main_len=main_len, h_blk=h_blk)

    wdw = wdw_ref[...].astype(jnp.float32)
    alpha = alpha_ref[0].astype(jnp.float32)
    n = wdw.shape[0]

    for cg0 in range(0, n, cg):
        for j0 in range(0, lt, c):
            y = _dw_prelu_chunk(xc_ref, wdw, alpha, cg0, cg, j0, c, lead=lead,
                                padding=padding, stride=stride, dilation=dilation,
                                kernel_size=kernel_size)
            y_ref[cg0:cg0 + cg, j0:j0 + c] = y.astype(y_ref.dtype)

    # gLN is already folded into weff/beff per batch, so the pointwise conv is a
    # single MXU matmul; columns >= L_out of the last tile are discarded by Pallas.
    out = jnp.dot(weff_ref[0], y_ref[...], preferred_element_type=jnp.float32,
                  precision=precision)
    out = out + beff_ref[0]
    o_ref[0] = out.astype(o_ref.dtype)


# ------------------------------------ wrapper --------------------------------------
def depthwise_separable_conv(x, w_dw, alpha, gamma, beta, w_pw, *, kernel_size,
                             stride, padding, dilation, time_tile=None,
                             matmul_dtype=None):
    """x: [M, N, K]; w_dw: [N, KS]; alpha: scalar; gamma/beta: [N, 1];
       w_pw: [C_out, N]  ->  [M, C_out, L_out]"""
    m, n, k_len = x.shape
    c_out = w_pw.shape[0]
    l_out = (k_len + 2 * padding - dilation * (kernel_size - 1) - 1) // stride + 1
    assert l_out > 0

    if matmul_dtype is None:
        matmul_dtype = (jnp.bfloat16 if x.dtype in (jnp.bfloat16, jnp.float16)
                        else jnp.float32)
    mm_f32 = jnp.dtype(matmul_dtype) == jnp.dtype(jnp.float32)
    mm_precision = lax.Precision.HIGHEST if mm_f32 else None

    halo = dilation * (kernel_size - 1)
    h_blk = _round_up(max(halo, padding, 1), 128)       # lane-aligned halo block
    lead = _round_up(padding, 128) if padding > 0 else 0

    x_bytes = jnp.dtype(x.dtype).itemsize
    mm_bytes = jnp.dtype(matmul_dtype).itemsize
    vmem_limit = _vmem_limit_bytes()
    cap = time_tile if time_tile is not None else 4096
    lt = _pick_lt(l_out, n, c_out, stride, h_blk, lead, x_bytes, mm_bytes, x_bytes,
                  cap, int(vmem_limit * 0.85))

    main_len = lt * stride
    chunk_len = lead + main_len + h_blk
    num_t = -(-l_out // lt)
    # Megacore: give pass 1 a second parallel axis when batch alone can't fill 2 TCs.
    split = 2 if (m == 1 and num_t >= 2) else 1
    num_t_s = -(-num_t // split)

    cg = _pick_group(n)                                  # channel register-tile
    c = 256 if lt % 256 == 0 else 128                    # lane register-tile

    alpha_arr = jnp.reshape(alpha, (1,)).astype(jnp.float32)
    wdw2 = w_dw.reshape(n, kernel_size)

    x_left, x_main, x_right = _x_specs(n, main_len, h_blk, k_len, num_t_s)
    wdw_spec = pl.BlockSpec((n, kernel_size), lambda b, s, t: (0, 0))
    alpha_spec = pl.BlockSpec(memory_space=pltpu.MemorySpace.SMEM)

    common = dict(k_len=k_len, padding=padding, lead=lead, main_len=main_len,
                  h_blk=h_blk, stride=stride, dilation=dilation,
                  kernel_size=kernel_size, lt=lt, num_t_s=num_t_s, cg=cg, c=c)

    # ---- pass 1: per-channel sum / sum-of-squares of PReLU(dwconv(x)) ----
    stats = pl.pallas_call(
        functools.partial(_stats_kernel, l_out=l_out, **common),
        out_shape=jax.ShapeDtypeStruct((m, split, n, 2), jnp.float32),
        grid_spec=pltpu.PrefetchScalarGridSpec(
            num_scalar_prefetch=0,
            grid=(m, split, num_t_s),
            in_specs=[x_left, x_main, x_right, wdw_spec, alpha_spec],
            out_specs=pl.BlockSpec((1, 1, n, 2), lambda b, s, t: (b, s, 0, 0)),
            scratch_shapes=[pltpu.VMEM((n, chunk_len), x.dtype)]),
        compiler_params=pltpu.CompilerParams(
            dimension_semantics=("parallel", "parallel", "arbitrary"),
            vmem_limit_bytes=vmem_limit),
    )(x, x, x, wdw2, alpha_arr)

    # Tiny per-batch finalization + gLN fold (outside the kernels).
    count = float(n * l_out)
    s1 = jnp.sum(stats[..., 0], axis=(1, 2))
    s2 = jnp.sum(stats[..., 1], axis=(1, 2))
    mean = s1 / count
    # TODO(synk): E[x^2]-E[x]^2 in f32 can cancel for very long sequences with large
    # means; a compensated two-term accumulation would be safer.
    var = jnp.maximum(s2 / count - mean * mean, 0.0)
    inv_std = lax.rsqrt(var + EPS)

    g = gamma.reshape(-1).astype(jnp.float32)
    bt = beta.reshape(-1).astype(jnp.float32)
    wpw = w_pw.astype(jnp.float32)
    scale = g[None, :] * inv_std[:, None]                                   # (m, n)
    shift = bt[None, :] - g[None, :] * (mean * inv_std)[:, None]            # (m, n)
    w_eff = (wpw[None] * scale[:, None, :]).astype(matmul_dtype)            # (m, c_out, n)
    b_eff = jnp.einsum("on,mn->mo", wpw, shift)[:, :, None]                 # (m, c_out, 1)

    # ---- pass 2: recompute tile, folded pointwise matmul, write exactly L_out ----
    out = pl.pallas_call(
        functools.partial(_apply_kernel, precision=mm_precision, **common),
        out_shape=jax.ShapeDtypeStruct((m, c_out, l_out), x.dtype),
        grid_spec=pltpu.PrefetchScalarGridSpec(
            num_scalar_prefetch=0,
            grid=(m, 1, num_t),
            in_specs=[x_left, x_main, x_right, wdw_spec, alpha_spec,
                      pl.BlockSpec((1, c_out, n), lambda b, s, t: (b, 0, 0)),
                      pl.BlockSpec((1, c_out, 1), lambda b, s, t: (b, 0, 0))],
            out_specs=pl.BlockSpec((1, c_out, lt), lambda b, s, t: (b, 0, t)),
            scratch_shapes=[pltpu.VMEM((n, chunk_len), x.dtype),
                            pltpu.VMEM((n, lt), matmul_dtype)]),
        compiler_params=pltpu.CompilerParams(
            dimension_semantics=("parallel", "parallel", "parallel"),
            vmem_limit_bytes=vmem_limit),
    )(x, x, x, wdw2, alpha_arr, w_eff, b_eff)
    return out


# ------------------------------------ reference ------------------------------------
def _reference(x, w_dw, alpha, gamma, beta, w_pw, *, kernel_size, stride, padding,
               dilation):
    n = x.shape[1]
    dw = lax.conv_general_dilated(
        x, w_dw.reshape(n, 1, kernel_size),
        window_strides=(stride,), padding=[(padding, padding)],
        rhs_dilation=(dilation,), feature_group_count=n,
        dimension_numbers=("NCH", "OIH", "NCH"))
    y = jnp.where(dw > 0, dw, alpha * dw)
    mean = y.mean(axis=(1, 2), keepdims=True)
    var = ((y - mean) ** 2).mean(axis=(1, 2), keepdims=True)
    gln = (gamma.reshape(1, n, 1) * (y - mean) / jnp.sqrt(var + EPS)
           + beta.reshape(1, n, 1))
    return jnp.einsum("on,mnl->mol", w_pw, gln)


if __name__ == "__main__":
    base_key = jax.random.PRNGKey(0)

    def run_case(idx, m, n, c_out, k_len, ks, stride, padding, dilation,
                 time_tile, matmul_dtype, atol, rtol):
        key = jax.random.fold_in(base_key, idx)
        kx, kdw, kpw, kg = jax.random.split(key, 4)
        x = jax.random.normal(kx, (m, n, k_len), jnp.float32)
        w_dw = jax.random.normal(kdw, (n, ks), jnp.float32) * 0.5
        w_pw = jax.random.normal(kpw, (c_out, n), jnp.float32) * 0.5
        alpha = jnp.asarray(0.25, jnp.float32)
        gamma = 1.0 + 0.1 * jax.random.normal(kg, (n, 1), jnp.float32)
        beta = jnp.full((n, 1), 0.05, jnp.float32)

        ref = _reference(x, w_dw, alpha, gamma, beta, w_pw, kernel_size=ks,
                         stride=stride, padding=padding, dilation=dilation)
        out = depthwise_separable_conv(
            x, w_dw, alpha, gamma, beta, w_pw, kernel_size=ks, stride=stride,
            padding=padding, dilation=dilation, time_tile=time_tile,
            matmul_dtype=matmul_dtype)
        out = jax.block_until_ready(out)
        assert out.shape == ref.shape, (out.shape, ref.shape)
        err = float(jnp.max(jnp.abs(out - ref)))
        assert jnp.allclose(out, ref, atol=atol, rtol=rtol), (idx, err)

    # 1) Small single-tile config, f32 matmul path.
    run_case(0, m=2, n=4, c_out=8, k_len=16, ks=3, stride=1, padding=2, dilation=2,
             time_tile=None, matmul_dtype=None, atol=2e-3, rtol=2e-3)
    # 2) Multi-tile + megacore time split + bf16 MXU operand path.
    run_case(1, m=1, n=8, c_out=16, k_len=600, ks=3, stride=1, padding=4, dilation=4,
             time_tile=128, matmul_dtype=jnp.bfloat16, atol=2e-1, rtol=2e-1)
    # 3) Same multi-tile shape, f32 path (tight tolerance).
    run_case(2, m=1, n=8, c_out=16, k_len=600, ks=3, stride=1, padding=4, dilation=4,
             time_tile=128, matmul_dtype=jnp.float32, atol=5e-3, rtol=5e-3)

    print("KERNEL_OK")
</pallas_src>

<mosaic_0001>
module attributes {stable_mosaic.version = 11 : i64} {
  func.func @_stats_kernel(%arg0: i32, %arg1: i32, %arg2: i32, %arg3: memref<1x4x128xf32, #tpu.memory_space<vmem>>, %arg4: memref<1x4x128xf32, #tpu.memory_space<vmem>>, %arg5: memref<1x4x128xf32, #tpu.memory_space<vmem>>, %arg6: memref<4x3xf32, #tpu.memory_space<vmem>>, %arg7: memref<1xf32, #tpu.memory_space<smem>>, %arg8: memref<1x1x4x2xf32, #tpu.memory_space<vmem>>, %arg9: memref<4x384xf32, #tpu.memory_space<vmem>>) attributes {dimension_semantics = [#tpu.dimension_semantics<parallel>, #tpu.dimension_semantics<parallel>, #tpu.dimension_semantics<arbitrary>], iteration_bounds = array<i64: 2, 1, 1>, scalar_prefetch = 0 : i64, scratch_operands = 1 : i64, tpu.core_type = #tpu.core_type<tc>, window_params = [{transform_indices = @transform_0, window_bounds = array<i64: 1, 4, 128>}, {transform_indices = @transform_1, window_bounds = array<i64: 1, 4, 128>}, {transform_indices = @transform_2, window_bounds = array<i64: 1, 4, 128>}, {pipeline_mode = #tpu.pipeline_mode<synchronous>, transform_indices = @transform_3, window_bounds = array<i64: 4, 3>}, {transform_indices = @transform_4, window_bounds = array<i64: 1>}, {transform_indices = @transform_5, window_bounds = array<i64: 1, 1, 4, 2>}]} {
    %c1_i32 = arith.constant 1 : i32
    %0 = arith.muli %arg1, %c1_i32 : i32
    %1 = arith.addi %0, %arg2 : i32
    %c0_i32 = arith.constant 0 : i32
    %2 = arith.cmpi eq, %arg2, %c0_i32 : i32
    %3 = arith.extui %2 : i1 to i32
    %c0_i32_0 = arith.constant 0 : i32
    %4 = arith.cmpi ne, %3, %c0_i32_0 : i32
    scf.if %4 {
      %cst_41 = arith.constant 0.000000e+00 : f32
      %90 = vector.broadcast %cst_41 : f32 to vector<1x1x4x2xf32>
      %c0_42 = arith.constant 0 : index
      %c0_43 = arith.constant 0 : index
      %c0_44 = arith.constant 0 : index
      %c0_45 = arith.constant 0 : index
      %91 = vector.load %arg8[%c0_42, %c0_43, %c0_44, %c0_45] : memref<1x1x4x2xf32, #tpu.memory_space<vmem>>, vector<1x1x4x2xf32>
      tpu.vector_store %arg8[%c0_42, %c0_43, %c0_44, %c0_45], %90 {strides = array<i32>} : memref<1x1x4x2xf32, #tpu.memory_space<vmem>>, vector<1x1x4x2xf32>,
    } else {
    }
    %c128_i32 = arith.constant 128 : i32
    %5 = arith.muli %1, %c128_i32 : i32
    %c2_i32 = arith.constant 2 : i32
    %6 = arith.subi %5, %c2_i32 : i32
    %7 = tpu.iota {dimensions = array<i32: 1>} : vector<1x2xi32>
    %8 = vector.broadcast %6 : i32 to vector<1x2xi32>
    %9 = arith.addi %8, %7 : vector<1x2xi32>
    %c0 = arith.constant 0 : index
    %c0_1 = arith.constant 0 : index
    %c126 = arith.constant 126 : index
    %10 = vector.load %arg3[%c0, %c0_1, %c126] : memref<1x4x128xf32, #tpu.memory_space<vmem>>, vector<1x4x2xf32>
    %11 = vector.shape_cast %10 : vector<1x4x2xf32> to vector<4x2xf32>
    %c0_i32_2 = arith.constant 0 : i32
    %12 = vector.broadcast %c0_i32_2 : i32 to vector<1x2xi32>
    %13 = arith.cmpi sge, %9, %12 : vector<1x2xi32>
    %c16_i32 = arith.constant 16 : i32
    %14 = vector.broadcast %c16_i32 : i32 to vector<1x2xi32>
    %15 = arith.cmpi slt, %9, %14 : vector<1x2xi32>
    %16 = arith.andi %13, %15 : vector<1x2xi1>
    %cst = arith.constant 0.000000e+00 : f32
    %17 = vector.shape_cast %16 : vector<1x2xi1> to vector<1x2xi1>
    %18 = vector.broadcast %17 : vector<1x2xi1> to vector<4x2xi1>
    %19 = vector.broadcast %cst : f32 to vector<4x2xf32>
    %20 = arith.select %18, %11, %19 : vector<4x2xi1>, vector<4x2xf32>
    %c0_3 = arith.constant 0 : index
    %c126_4 = arith.constant 126 : index
    %21 = vector.load %arg9[%c0_3, %c126_4] : memref<4x384xf32, #tpu.memory_space<vmem>>, vector<4x2xf32>
    tpu.vector_store %arg9[%c0_3, %c126_4], %20 {strides = array<i32>} : memref<4x384xf32, #tpu.memory_space<vmem>>, vector<4x2xf32>,
    %c128_i32_5 = arith.constant 128 : i32
    %22 = arith.addi %5, %c128_i32_5 : i32
    %c16_i32_6 = arith.constant 16 : i32
    %23 = arith.cmpi sle, %22, %c16_i32_6 : i32
    %24 = arith.extui %23 : i1 to i32
    %c0_i32_7 = arith.constant 0 : i32
    %25 = arith.cmpi ne, %24, %c0_i32_7 : i32
    scf.if %25 {
      %c0_41 = arith.constant 0 : index
      %c0_42 = arith.constant 0 : index
      %c0_43 = arith.constant 0 : index
      %90 = vector.load %arg4[%c0_41, %c0_42, %c0_43] : memref<1x4x128xf32, #tpu.memory_space<vmem>>, vector<1x4x128xf32>
      %91 = vector.shape_cast %90 : vector<1x4x128xf32> to vector<4x128xf32>
      %c0_44 = arith.constant 0 : index
      %c128_45 = arith.constant 128 : index
      %92 = vector.load %arg9[%c0_44, %c128_45] : memref<4x384xf32, #tpu.memory_space<vmem>>, vector<4x128xf32>
      tpu.vector_store %arg9[%c0_44, %c128_45], %91 {strides = array<i32>} : memref<4x384xf32, #tpu.memory_space<vmem>>, vector<4x128xf32>,
    } else {
    }
    %true = arith.constant true
    %26 = arith.xori %23, %true : i1
    %27 = arith.extui %26 : i1 to i32
    %cst_8 = arith.constant 0.000000e+00 : f32
    %c0_i32_9 = arith.constant 0 : i32
    %28 = arith.cmpi ne, %27, %c0_i32_9 : i32
    scf.if %28 {
      %90 = tpu.iota {dimensions = array<i32: 1>} : vector<1x128xi32>
      %91 = vector.broadcast %5 : i32 to vector<1x128xi32>
      %92 = arith.addi %91, %90 : vector<1x128xi32>
      %c16_i32_41 = arith.constant 16 : i32
      %93 = vector.broadcast %c16_i32_41 : i32 to vector<1x128xi32>
      %94 = arith.cmpi slt, %92, %93 : vector<1x128xi32>
      %c0_42 = arith.constant 0 : index
      %c0_43 = arith.constant 0 : index
      %c0_44 = arith.constant 0 : index
      %95 = vector.load %arg4[%c0_42, %c0_43, %c0_44] : memref<1x4x128xf32, #tpu.memory_space<vmem>>, vector<1x4x128xf32>
      %96 = vector.shape_cast %95 : vector<1x4x128xf32> to vector<4x128xf32>
      %97 = vector.shape_cast %94 : vector<1x128xi1> to vector<1x128xi1>
      %98 = vector.broadcast %97 : vector<1x128xi1> to vector<4x128xi1>
      %99 = vector.broadcast %cst_8 : f32 to vector<4x128xf32>
      %100 = arith.select %98, %96, %99 : vector<4x128xi1>, vector<4x128xf32>
      %c0_45 = arith.constant 0 : index
      %c128_46 = arith.constant 128 : index
      %101 = vector.load %arg9[%c0_45, %c128_46] : memref<4x384xf32, #tpu.memory_space<vmem>>, vector<4x128xf32>
      tpu.vector_store %arg9[%c0_45, %c128_46], %100 {strides = array<i32>} : memref<4x384xf32, #tpu.memory_space<vmem>>, vector<4x128xf32>,
    } else {
    }
    %c128_i32_10 = arith.constant 128 : i32
    %29 = arith.addi %5, %c128_i32_10 : i32
    %30 = tpu.iota {dimensions = array<i32: 1>} : vector<1x128xi32>
    %31 = vector.broadcast %29 : i32 to vector<1x128xi32>
    %32 = arith.addi %31, %30 : vector<1x128xi32>
    %c16_i32_11 = arith.constant 16 : i32
    %33 = vector.broadcast %c16_i32_11 : i32 to vector<1x128xi32>
    %34 = arith.cmpi slt, %32, %33 : vector<1x128xi32>
    %c0_12 = arith.constant 0 : index
    %c0_13 = arith.constant 0 : index
    %c0_14 = arith.constant 0 : index
    %35 = vector.load %arg5[%c0_12, %c0_13, %c0_14] : memref<1x4x128xf32, #tpu.memory_space<vmem>>, vector<1x4x128xf32>
    %36 = vector.shape_cast %35 : vector<1x4x128xf32> to vector<4x128xf32>
    %cst_15 = arith.constant 0.000000e+00 : f32
    %37 = vector.shape_cast %34 : vector<1x128xi1> to vector<1x128xi1>
    %38 = vector.broadcast %37 : vector<1x128xi1> to vector<4x128xi1>
    %39 = vector.broadcast %cst_15 : f32 to vector<4x128xf32>
    %40 = arith.select %38, %36, %39 : vector<4x128xi1>, vector<4x128xf32>
    %c0_16 = arith.constant 0 : index
    %c256 = arith.constant 256 : index
    %41 = vector.load %arg9[%c0_16, %c256] : memref<4x384xf32, #tpu.memory_space<vmem>>, vector<4x128xf32>
    tpu.vector_store %arg9[%c0_16, %c256], %40 {strides = array<i32>} : memref<4x384xf32, #tpu.memory_space<vmem>>, vector<4x128xf32>,
    %c0_17 = arith.constant 0 : index
    %c0_18 = arith.constant 0 : index
    %42 = vector.load %arg6[%c0_17, %c0_18] : memref<4x3xf32, #tpu.memory_space<vmem>>, vector<4x3xf32>
    %c0_19 = arith.constant 0 : index
    %43 = memref.load %arg7[%c0_19] : memref<1xf32, #tpu.memory_space<smem>>
    %cst_20 = arith.constant 0.000000e+00 : f32
    %44 = vector.broadcast %cst_20 : f32 to vector<4x1xf32>
    %cst_21 = arith.constant 0.000000e+00 : f32
    %45 = vector.broadcast %cst_21 : f32 to vector<4x1xf32>
    %c0_22 = arith.constant 0 : index
    %c126_23 = arith.constant 126 : index
    %46 = vector.load %arg9[%c0_22, %c126_23] : memref<4x384xf32, #tpu.memory_space<vmem>>, vector<4x128xf32>
    %47 = vector.extract_strided_slice %42 {offsets = [0, 0], sizes = [4, 1], strides = [1, 1]} : vector<4x3xf32> to vector<4x1xf32>
    %48 = vector.broadcast %47 : vector<4x1xf32> to vector<4x128xf32>
    %49 = arith.mulf %46, %48 : vector<4x128xf32>
    %c0_24 = arith.constant 0 : index
    %c128 = arith.constant 128 : index
    %50 = vector.load %arg9[%c0_24, %c128] : memref<4x384xf32, #tpu.memory_space<vmem>>, vector<4x128xf32>
    %51 = vector.extract_strided_slice %42 {offsets = [0, 1], sizes = [4, 1], strides = [1, 1]} : vector<4x3xf32> to vector<4x1xf32>
    %52 = vector.broadcast %51 : vector<4x1xf32> to vector<4x128xf32>
    %53 = arith.mulf %50, %52 : vector<4x128xf32>
    %54 = arith.addf %49, %53 : vector<4x128xf32>
    %c0_25 = arith.constant 0 : index
    %c130 = arith.constant 130 : index
    %55 = vector.load %arg9[%c0_25, %c130] : memref<4x384xf32, #tpu.memory_space<vmem>>, vector<4x128xf32>
    %56 = vector.extract_strided_slice %42 {offsets = [0, 2], sizes = [4, 1], strides = [1, 1]} : vector<4x3xf32> to vector<4x1xf32>
    %57 = vector.broadcast %56 : vector<4x1xf32> to vector<4x128xf32>
    %58 = arith.mulf %55, %57 : vector<4x128xf32>
    %59 = arith.addf %54, %58 : vector<4x128xf32>
    %cst_26 = arith.constant 0.000000e+00 : f32
    %60 = vector.broadcast %cst_26 : f32 to vector<4x128xf32>
    %61 = arith.cmpf ogt, %59, %60 : vector<4x128xf32>
    %62 = vector.broadcast %43 : f32 to vector<4x128xf32>
    %63 = arith.mulf %62, %59 : vector<4x128xf32>
    %64 = arith.select %61, %59, %63 : vector<4x128xi1>, vector<4x128xf32>
    %c128_i32_27 = arith.constant 128 : i32
    %65 = arith.muli %1, %c128_i32_27 : i32
    %c0_i32_28 = arith.constant 0 : i32
    %66 = arith.addi %65, %c0_i32_28 : i32
    %67 = tpu.iota {dimensions = array<i32: 1>} : vector<1x128xi32>
    %68 = vector.broadcast %66 : i32 to vector<1x128xi32>
    %69 = arith.addi %68, %67 : vector<1x128xi32>
    %c16_i32_29 = arith.constant 16 : i32
    %70 = vector.broadcast %c16_i32_29 : i32 to vector<1x128xi32>
    %71 = arith.cmpi slt, %69, %70 : vector<1x128xi32>
    %cst_30 = arith.constant 0.000000e+00 : f32
    %72 = vector.shape_cast %71 : vector<1x128xi1> to vector<1x128xi1>
    %73 = vector.broadcast %72 : vector<1x128xi1> to vector<4x128xi1>
    %74 = vector.broadcast %cst_30 : f32 to vector<4x128xf32>
    %75 = arith.select %73, %64, %74 : vector<4x128xi1>, vector<4x128xf32>
    %cst_31 = arith.constant dense<0.000000e+00> : vector<4xf32>
    %76 = vector.multi_reduction <add>, %75, %cst_31 [1] : vector<4x128xf32> to vector<4xf32>
    %77 = vector.shape_cast %76 : vector<4xf32> to vector<4x1xf32>
    %78 = arith.addf %44, %77 : vector<4x1xf32>
    %79 = arith.mulf %75, %75 : vector<4x128xf32>
    %cst_32 = arith.constant dense<0.000000e+00> : vector<4xf32>
    %80 = vector.multi_reduction <add>, %79, %cst_32 [1] : vector<4x128xf32> to vector<4xf32>
    %81 = vector.shape_cast %80 : vector<4xf32> to vector<4x1xf32>
    %82 = arith.addf %45, %81 : vector<4x1xf32>
    %83 = tpu.concatenate %78, %82 in 1 : vector<4x1xf32>, vector<4x1xf32> -> vector<4x2xf32>
    %c0_33 = arith.constant 0 : index
    %c0_34 = arith.constant 0 : index
    %c0_35 = arith.constant 0 : index
    %c0_36 = arith.constant 0 : index
    %84 = vector.load %arg8[%c0_33, %c0_34, %c0_35, %c0_36] : memref<1x1x4x2xf32, #tpu.memory_space<vmem>>, vector<1x1x4x2xf32>
    %85 = vector.shape_cast %84 : vector<1x1x4x2xf32> to vector<4x2xf32>
    %86 = arith.addf %85, %83 : vector<4x2xf32>
    %c0_37 = arith.constant 0 : index
    %c0_38 = arith.constant 0 : index
    %c0_39 = arith.constant 0 : index
    %c0_40 = arith.constant 0 : index
    %87 = vector.load %arg8[%c0_37, %c0_38, %c0_39, %c0_40] : memref<1x1x4x2xf32, #tpu.memory_space<vmem>>, vector<1x1x4x2xf32>
    %88 = vector.shape_cast %87 : vector<1x1x4x2xf32> to vector<4x2xf32>
    %89 = vector.shape_cast %86 : vector<4x2xf32> to vector<1x1x4x2xf32>
    tpu.vector_store %arg8[%c0_37, %c0_38, %c0_39, %c0_40], %89 {strides = array<i32>} : memref<1x1x4x2xf32, #tpu.memory_space<vmem>>, vector<1x1x4x2xf32>,
    return
  }
  func.func @transform_0(%arg0: i32, %arg1: i32, %arg2: i32) -> (i32, i32, i32) {
    %c1_i32 = arith.constant 1 : i32
    %0 = arith.muli %arg1, %c1_i32 : i32
    %1 = arith.addi %0, %arg2 : i32
    %c1_i32_0 = arith.constant 1 : i32
    %2 = arith.muli %1, %c1_i32_0 : i32
    %c1_i32_1 = arith.constant 1 : i32
    %3 = arith.subi %2, %c1_i32_1 : i32
    %c0_i32 = arith.constant 0 : i32
    %4 = arith.minsi %3, %c0_i32 : i32
    %c0_i32_2 = arith.constant 0 : i32
    %5 = arith.maxsi %4, %c0_i32_2 : i32
    %c0_i32_3 = arith.constant 0 : i32
    %c0_i32_4 = arith.constant 0 : i32
    return %arg0, %c0_i32_3, %5 : i32, i32, i32
  }
  func.func @transform_1(%arg0: i32, %arg1: i32, %arg2: i32) -> (i32, i32, i32) {
    %c1_i32 = arith.constant 1 : i32
    %0 = arith.muli %arg1, %c1_i32 : i32
    %1 = arith.addi %0, %arg2 : i32
    %c0_i32 = arith.constant 0 : i32
    %2 = arith.minsi %1, %c0_i32 : i32
    %c0_i32_0 = arith.constant 0 : i32
    %3 = arith.maxsi %2, %c0_i32_0 : i32
    %c0_i32_1 = arith.constant 0 : i32
    %c0_i32_2 = arith.constant 0 : i32
    return %arg0, %c0_i32_1, %3 : i32, i32, i32
  }
  func.func @transform_2(%arg0: i32, %arg1: i32, %arg2: i32) -> (i32, i32, i32) {
    %c1_i32 = arith.constant 1 : i32
    %0 = arith.muli %arg1, %c1_i32 : i32
    %1 = arith.addi %0, %arg2 : i32
    %c1_i32_0 = arith.constant 1 : i32
    %2 = arith.addi %1, %c1_i32_0 : i32
    %c1_i32_1 = arith.constant 1 : i32
    %3 = arith.muli %2, %c1_i32_1 : i32
    %c0_i32 = arith.constant 0 : i32
    %4 = arith.minsi %3, %c0_i32 : i32
    %c0_i32_2 = arith.constant 0 : i32
    %5 = arith.maxsi %4, %c0_i32_2 : i32
    %c0_i32_3 = arith.constant 0 : i32
    %c0_i32_4 = arith.constant 0 : i32
    return %arg0, %c0_i32_3, %5 : i32, i32, i32
  }
  func.func @transform_3(%arg0: i32, %arg1: i32, %arg2: i32) -> (i32, i32) {
    %c0_i32 = arith.constant 0 : i32
    %c0_i32_0 = arith.constant 0 : i32
    %c0_i32_1 = arith.constant 0 : i32
    return %c0_i32, %c0_i32_0 : i32, i32
  }
  func.func @transform_4(%arg0: i32, %arg1: i32, %arg2: i32) -> i32 {
    %c0_i32 = arith.constant 0 : i32
    %c0_i32_0 = arith.constant 0 : i32
    return %c0_i32 : i32
  }
  func.func @transform_5(%arg0: i32, %arg1: i32, %arg2: i32) -> (i32, i32, i32, i32) {
    %c0_i32 = arith.constant 0 : i32
    %c0_i32_0 = arith.constant 0 : i32
    %c0_i32_1 = arith.constant 0 : i32
    return %arg0, %arg1, %c0_i32, %c0_i32_0 : i32, i32, i32, i32
  }
}

</mosaic_0001>

<bundles_post_ra>
// kernel: tpu_custom_call.1
= control target key start
LH: loop header
LB: loop body
LE: loop exit
PB: predicated region body
PF: predicated region fallthrough
CT: control target
= control target key end

     0   :  { %s1111_s0 = inlined_call_operand.hbm [shape: f32[2,4,16], index: 0, kind: input, shape index: {}]   ;;  %s1112_s1 = inlined_call_operand.hbm [shape: f32[2,4,16], index: 1, kind: input, shape index: {}]   ;;  %s1113_s2 = inlined_call_operand.vmem [shape: f32[2,4,16], index: 2, kind: input, shape index: {}]   ;;  %s1114_s3 = inlined_call_operand.vmem [shape: f32[4,3], index: 3, kind: input, shape index: {}]   ;;  %s1115_s4 = inlined_call_operand.<no memory space> [shape: f32[1], index: 4, kind: input, shape index: {}]   ;;  %s1116_s5 = inlined_call_operand.vmem [shape: f32[2,1,4,2], index: 5, kind: output, shape index: {}]  }
   0x1   :  { %10 = sst [smem:[#allocation3]] %s1115_s4 }
   0x2   :  { %11 = vsyncpa [#allocation5], 0 }
   0x3   :  { %13 = vsyncpa [#allocation5 + $0x1], 0 }
   0x4   :  { %14 = vsyncpa [#allocation7], 0 }
   0x5   :  { %16 = vsyncpa [#allocation7 + $0x1], 0  ;;  %s923_s20 = smov 0   ;;  %s925_s2 = smov 0  }
   0x6   :  { %s927_s21 = smov 0   ;;  %s929_s22 = smov 0  }
   0x7   :  { %s931_s23 = smov 0   ;;  %s933_s24 = smov 0  }
   0x8 LB: > { %s679_s4 = sadd.s32 4294967295, %s879_s24   ;;  %s41_s25 = sadd.s32 1, %s875_s23  ;;  %s879_s24 = sphi %s933_s24, %s22_s24   ;;  %s875_s23 = sphi %s931_s23, %s1130_s23   ;;  %s871_s22 = sphi %s929_s22, %s1129_s22   ;;  %s867_s21 = sphi %s927_s21, %s1128_s21   ;;  %s863_s2 = sphi %s925_s2, %s1127_s2   ;;  %s859_s20 = sphi %s923_s20, %s1126_s20  }
   0x9   : > { %p43_p0 = scmp.ge.s32.totalorder %s41_s25, 2  ;;  %s62_s26 = sadd.s32 1, %s867_s21 }
   0xa   : > { %p69_p1 = scmp.ne.s32.totalorder %s867_s21, %s863_s2  ;;  %p70_p2 = scmp.eq.s32.totalorder %s879_s24, 0 }
   0xb   : > { %s1132_s25 = smov (%p43_p0, %s41_s25), 0  ;;  %p75_p4 = scmp.ne.s32.totalorder %s863_s2, %s859_s20 }
   0xc   : > { %p959_p3 = por %p70_p2, %p69_p1  ;;  %s57_s28 = ssub.s32 %s875_s23, %s1132_s25 }
   0xd   : > { %p76_p5 = scmp.eq.s32.totalorder %s679_s4, 0  ;;  %p60_p6 = scmp.eq.s32.totalorder %s57_s28, 0 }
   0xe   : > { %p705_p8 = scmp.lt.s32.totalorder %s879_s24, 2  ;;  %s975_s6 = sand.u32 1, %s867_s21  }
   0xf   : > { %p966_p7 = por %p76_p5, %p75_p4  ;;  %s684_s7 = sshll.u32 %s875_s23, 6 }
  0x10   : > { %s972_s30 = scalar_select %p60_p6, %s867_s21, %s62_s26  }
  0x11   : > { %s1119_s29 = scalar_select %p966_p7, 1, 0 }
  0x12   : > { %s683_s8 = sshll.u32 %s975_s6, 2  ;;  %s984_s11 = scalar_lea.hbm %s1111_s0, %s684_s7 }
  0x13   : > { %s257_s12 = scalar_lea.vmem [#allocation4], %s683_s8  ;;  %p990_p9 = pnand %p705_p8, %p959_p3 }
  0x14   : > { %s271_s13 = sshll.u32 %s257_s12, 4  ;;  %s254_s15 = scalar_lea.sflag [#allocation5], %s975_s6  ;;  %s994_s13 = int_to_ptr.vmem [resolvable:$true] %s271_s13 }
  0x15   : > { %s765_s16 = scalar_lea.hbm %s984_s11, 64  ;;  %p767_p13 = pneg %p990_p9 }
  0x16   : > { %p766_p12 = scmp.ne.s32.totalorder %s984_s11, %s765_s16  ;;  %s770_s19 = scalar_lea.hbm %s1111_s0, 128 }
  0x17   : > { %p771_p2 = scmp.lt.u32.totalorder %s984_s11, %s1111_s0  ;;  %p772_p3 = scmp.lt.u32.totalorder %s770_s19, %s765_s16 }
  0x18   : > { %p768_p0 = pnand %p767_p13, %p766_p12  ;;  %p774_p5 = scmp.lt.u32.totalorder %s765_s16, %s984_s11 }
  0x19   : > { %p773_p4 = por %p772_p3, %p771_p2 }
  0x1a   : > { %p769_p1 = pneg %p768_p0 }
  0x1b   : > { %p775_p6 = por %p774_p5, %p773_p4 }
  0x1d   : > { %p776_p8 = pnand %p775_p6, %p769_p1 }
  0x1f   : > { %779 = shalt.err (!%p776_p8)
}
  0x20   : > { %s780_s26 = scalar_lea.vmem %s994_s13, 64  ;;  %s881_s27 = smov [#allocation4]  }
  0x21   : > { %p781_p12 = scmp.ne.s32.totalorder %s994_s13, %s780_s26  ;;  %s785_s28 = sshll.u32 %s881_s27, 4  ;;  %s786_s28 = int_to_ptr.vmem [resolvable:$false] %s785_s28 }
  0x22   : > { %s787_s9 = scalar_lea.vmem %s786_s28, 128  ;;  %p788_p11 = scmp.lt.s32.totalorder %s994_s13, %s786_s28 }
  0x23   : > { %p783_p0 = pnand %p781_p12, %p767_p13  ;;  %p789_p2 = scmp.lt.s32.totalorder %s787_s9, %s780_s26 }
  0x25   : > { %p784_p10 = pneg %p783_p0  ;;  %p790_p3 = por %p789_p2, %p788_p11 }
  0x27   : > { %p791_p4 = pnand %p790_p3, %p784_p10 }
  0x29   : > { %794 = shalt.err (!%p791_p4)
}
  0x2a   : > { %701 = dma.hbm_to_vmem [thread:$0]  (!%p990_p9), %s984_s11, 64, %s994_s13, %s254_s15  }
  0x2b   : > { %p1121_p1 = scmp.lt.s32.totalorder %s879_s24, 3  ;;  %p1122_p5 = scmp.ge.s32.totalorder %s879_s24, 1 }
  0x2c   : > { %s1037_s17 = scalar_lea.hbm %s1112_s1, %s684_s7  ;;  %s282_s18 = scalar_lea.vmem [#allocation6], %s683_s8 }
  0x2d   : > { %p1028_p6 = pnand %p1122_p5, %p1121_p1  ;;  %s295_s19 = sshll.u32 %s282_s18, 4  ;;  %s296_s19 = int_to_ptr.vmem [resolvable:$true] %s295_s19 }
  0x2e   : > { %s279_s11 = scalar_lea.sflag [#allocation7], %s975_s6  ;;  %s795_s13 = scalar_lea.hbm %s1037_s17, 64 }
  0x2f   : > { %s1123_s10 = scalar_select %p1028_p6, 1, 0 }
  0x30   : > { %p796_p10 = scmp.ne.s32.totalorder %s1037_s17, %s795_s13  ;;  %s800_s7 = scalar_lea.hbm %s1112_s1, 128 }
  0x31   : > { %p801_p12 = scmp.lt.u32.totalorder %s1037_s17, %s1112_s1  ;;  %p802_p0 = scmp.lt.u32.totalorder %s800_s7, %s795_s13 }
  0x32   : > { %p798_p11 = pnand %p796_p10, %p767_p13  ;;  %p804_p3 = scmp.lt.u32.totalorder %s795_s13, %s1037_s17 }
  0x33   : > { %p803_p2 = por %p802_p0, %p801_p12 }
  0x34   : > { %p799_p8 = pneg %p798_p11 }
  0x35   : > { %p805_p4 = por %p804_p3, %p803_p2 }
  0x37   : > { %p806_p1 = pnand %p805_p4, %p799_p8 }
  0x39   : > { %809 = shalt.err (!%p806_p1)
}
  0x3a   : > { %s810_s6 = scalar_lea.vmem %s296_s19, 64  ;;  %s882_s8 = smov [#allocation6]  }
  0x3b   : > { %p811_p5 = scmp.ne.s32.totalorder %s296_s19, %s810_s6  ;;  %s815_s27 = sshll.u32 %s882_s8, 4  ;;  %s816_s27 = int_to_ptr.vmem [resolvable:$false] %s815_s27 }
  0x3c   : > { %s817_s28 = scalar_lea.vmem %s816_s27, 128  ;;  %p818_p7 = scmp.lt.s32.totalorder %s296_s19, %s816_s27 }
  0x3d   : > { %p813_p10 = pnand %p811_p5, %p767_p13  ;;  %p819_p6 = scmp.lt.s32.totalorder %s817_s28, %s810_s6 }
  0x3f   : > { %p814_p11 = pneg %p813_p10  ;;  %p820_p0 = por %p819_p6, %p818_p7 }
  0x41   : > { %p821_p12 = pnand %p820_p0, %p814_p11 }
  0x43   : > { %824 = shalt.err (!%p821_p12)
}
  0x44   : > { %704 = dma.hbm_to_vmem [thread:$0]  (!%p990_p9), %s1037_s17, 64, %s296_s19, %s279_s11  }
  0x45   : > { %p1124_p8 = scmp.ne.s32.totalorder %s1123_s10, 0 }
  0x46   : > { %s328_s9 = sand.u32 (!%p1124_p8), 1, %s863_s2   ;;  %p1125_p13 = scmp.ne.s32.totalorder (!%p1124_p8), %s1119_s29, 0 }
  0x47   : > { %326 = sbr.rel (%p1124_p8) target bundleno = 616 (0x268), region = 40  ;;  %s688_s12 = sshll.u32 (!%p1124_p8), %s328_s9, 2 }
  0x48   : > { %s329_s16 = scalar_lea.sflag (!%p1124_p8), [#allocation5], %s328_s9  ;;  %s332_s18 = scalar_lea.vmem (!%p1124_p8), [#allocation4], %s688_s12 }
  0x4e   : > { %850 = dma.done.wait (%p1125_p13), %s329_s16, 64  }
  0x4f   : > { %852 = vsyncadd (%p1125_p13), %s329_s16, 4294967232  ;;  %s338_s13 = scalar_lea.sflag [#allocation7], %s328_s9  ;;  %s341_s15 = scalar_lea.vmem [#allocation6], %s688_s12 }
  0x50   : > { %854 = dma.done.wait (%p1125_p13), %s338_s13, 64  }
  0x51   : > { %856 = vsyncadd (%p1125_p13), %s338_s13, 4294967232  ;;  %v434_v0 = vlaneseq  ;;  %v883_v1 = vmov 1   ;;  %v884_v2 = vmov 2   ;;  %v481_v4 = vld [vmem:[%s1114_s3] sm:$0xf]  ;;  %v885_v8 = vmov 0.0  }
  0x52   : > { %761 = vset.pattern.permute.xlu0 %v883_v1  ;;  %762 = vset.pattern.permute.xlu1 %v884_v2  ;;  %v468_v5 = vld [vmem:[%s341_s15] sm:$0xf]  ;;  %v438_v7 = vld [vmem:[%s332_s18] sm:$0xf]  ;;  %480 = vst [vmem:[#allocation2 + $0x8] sm:$0xf] %v885_v8 }
  0x53   : > { %v1072_v3 = vand.u32 127, %v434_v0  ;;  %492 = vperm.xlu0 %761, %v481_v4   ;;  %506 = vperm.xlu1 %762, %v481_v4   ;;  %s886_s29 = smov 2   ;;  %v887_v9 = vmov 0   ;;  %s888_s17 = smov 126   ;;  %vm453_vm4 = vcmask 1044464   ;;  %vm500_vm5 = vcmask 1031168  }
  0x54   : > { %s889_s19 = smov 124   ;;  %s482_s11 = sld [smem:[#allocation3]]  ;;  %vm514_vm6 = vcmask 1014784   ;;  %vm533_vm8 = vcmask 15360   ;;  %vm537_vm9 = vcmask 1043456   ;;  %vm430_vm10 = vcmask 11264  }
  0x55   : > { %vm467_vm0 = vcmp.lt.s32.totalorder %v1072_v3, 16  ;;  %v437_v10 = vadd.s32 4294967294, %v1072_v3  ;;  %p418_p7 = scmp.lt.s32.totalorder %s871_s22, 1  ;;  %vm547_vm11 = vcmask 7168  }
  0x56   : > { %v471_v6 = vsel %vm467_vm0, %v468_v5, 0.0 }
  0x57   : > { %472 = vst [vmem:[#allocation2 + $0x4] sm:$0xf] %v471_v6  ;;  %445 = vrot.lane.b32.xlu0 %v438_v7, %s886_s29  ;;  %vm439_vm1 = vcmp.ge.s32.totalorder %v437_v10, 0  ;;  %vm440_vm2 = vcmp.lt.s32.totalorder %v437_v10, 16  ;;  %s1134_s22 = smov (!%p418_p7, %s871_s22), 1 }
  0x58   : > { %763 = vset.pattern.permute.xlu0 %v887_v9  ;;  %vm441_vm3 = vmand %vm439_vm1, %vm440_vm2  ;;  %s691_s20 = sshll.u32 %s1134_s22, 2 }
  0x59   : > { %s424_s26 = scalar_lea.vmem %s1116_s5, %s691_s20 }
  0x5a   : > { %v519_v30 = vstv %s482_s11  ;;  %431 = vst.msk [vmem:[%s424_s26] sm:$0xf] %vm430_vm10, %v885_v8 }
  0x5b   : > { %486 = vperm.xlu0 %763, %v481_v4  }
  0x5e   : > { %v490_v13 = vld [vmem:[#allocation2 + $0x4] sm:$0xf] }
  0x5f   : > { %764 = vset.pattern.permute.xlu0 %v884_v2  ;;  %v504_v16 = vld [vmem:[#allocation2 + $0x4] sm:$0xff] }
  0x61   : > { %v549_v42 = vld [vmem:[%s424_s26] sm:$0xf] }
  0xd2   : > { %v493_v11 = vpop.permute.xlu0 %492  ;;  %v507_v15 = vpop.permute.xlu1 %506 }
  0xd3   : > { %v495_v17 = vmul.f32 %v493_v11, %v490_v13  ;;  %v509_v18 = vmul.f32 %v507_v15, %v504_v16 }
  0xd6   : > { %v446_v12 = vpop.permute.xlu0 %445 }
  0xd7   : > { %v448_v14 = vsel %vm441_vm3, %v446_v12, 0.0 }
  0xd8   : > { %450 = vrot.lane.b32.xlu1 %v448_v14, %s888_s17 }
  0xda   : > { %v487_v22 = vpop.permute.xlu0 %486 }
  0xdc   : > { %497 = vrot.lane.b32.xlu1 %v495_v17, %s888_s17 }
  0xe0   : > { %511 = vrot.lane.b32.xlu1 %v509_v18, %s889_s19 }
 0x14a   : > { %v451_v19 = vpop.permute.xlu1 %450 }
 0x14b   : > { %454 = vst.msk [vmem:[#allocation2] sm:$0xf] %vm453_vm4, %v451_v19 }
 0x14e   : > { %v498_v20 = vpop.permute.xlu1 %497 }
 0x14f   : > { %v499_v21 = vrot.slane %v498_v20, 4 }
 0x151   : > { %v501_v27 = vsel %vm500_vm5, %v499_v21, %v498_v20 }
 0x152   : > { %v512_v23 = vpop.permute.xlu1 %511  ;;  %v483_v24 = vld [vmem:[#allocation2] sm:$0xff] }
 0x153   : > { %v513_v25 = vrot.slane %v512_v23, 4  ;;  %v489_v26 = vmul.f32 %v487_v22, %v483_v24 }
 0x155   : > { %v515_v28 = vsel %vm514_vm6, %v513_v25, %v512_v23  ;;  %v503_v29 = vadd.f32 %v501_v27, %v489_v26 }
 0x157   : > { %v517_v31 = vadd.f32 %v515_v28, %v503_v29 }
 0x159   : > { %vm518_vm7 = vcmp.gt.f32.partialorder %v517_v31, 0.0  ;;  %v520_v32 = vmul.f32 %v519_v30, %v517_v31 }
 0x15b   : > { %v521_v33 = vsel %vm518_vm7, %v517_v31, %v520_v32 }
 0x15c   : > { %529 = vrot.lane.b32.xlu0 %v521_v33, %s886_s29  ;;  %v528_v34 = vcombine.high %v521_v33, %v521_v33 }
 0x15e   : > { %531 = vrot.lane.b32.xlu1 %v528_v34, %s886_s29 }
 0x1ce   : > { %v530_v35 = vpop.permute.xlu0 %529 }
 0x1d0   : > { %v532_v36 = vpop.permute.xlu1 %531 }
 0x1d1   : > { %v534_v37 = vsel %vm533_vm8, %v530_v35, %v532_v36 }
 0x1d2   : > { %v536_v38 = vsel %vm467_vm0, %v534_v37, 0.0 }
 0x1d3   : > { %v538_v39 = vsel %vm537_vm9, %v536_v38, 0.0  ;;  %v542_v40 = vmul.f32 %v536_v38, %v536_v38 }
 0x1d4   : > { %539 = vadd.xlane.f32.xlu0 %v538_v39 }
 0x1d5   : > { %v543_v41 = vsel %vm537_vm9, %v542_v40, 0.0 }
 0x1d6   : > { %544 = vadd.xlane.f32.xlu1 %v543_v41 }
 0x261   : > { %v540_v43 = vpop.xlane.xlu0 %539 }
 0x263   : > { %v545_v44 = vpop.xlane.xlu1 %544 }
 0x264   : > { %v548_v45 = vsel %vm547_vm11, %v540_v43, %v545_v44 }
 0x265   : > { %v550_v46 = vadd.f32 %v549_v42, %v548_v45 }
 0x267   : > { %552 = vst.msk [vmem:[%s424_s26] sm:$0xf] %vm430_vm10, %v550_v46 }
 0x268 PF: > { %s22_s24 = sadd.s32 1, %s879_s24   ;;  %s1126_s20 = smov %s863_s2 }
 0x269   : > { %p19_p9 = scmp.ge.s32.totalorder %s22_s24, 4   ;;  %s1127_s2 = smov %s867_s21 }
 0x26a   : > { %s1128_s21 = smov %s972_s30  ;;  %s1129_s22 = smov %s875_s23 }
 0x26b   : > { %s1130_s23 = smov %s1132_s25  ;;  %21 = sbr.rel (!%p19_p9) target bundleno = 8 (0x8), region = 108 }
 0x272   :  { %578 = vsyncpa [#allocation5], 1 }
 0x273   :  { %580 = vsyncpa [#allocation5 + $0x1], 1 }
 0x274   :  { %581 = vsyncpa [#allocation7], 1 }
 0x275   :  { %583 = vsyncpa [#allocation7 + $0x1], 1 }

</bundles_post_ra>
